<compile_context>
chip_gen: v5e
topology: v5e:2x2
jax: 0.10.0
libtpu: 0.0.40
codegen_flags: <defaults>
</compile_context>

<pallas_src>
import jax
import jax.numpy as jnp
import numpy as np
from jax import lax
from jax.experimental import pallas as pl
from jax.experimental.pallas import tpu as pltpu


def _round_up(x, m):
    return ((x + m - 1) // m) * m


def _pick_b_tile(requested, n, cv, m, hw, g_pad, vmem_limit_bytes):
    """Largest b_tile <= requested that fits the VMEM budget and keeps >=2
    grid steps (so both v7x TensorCores / megacore get work)."""
    budget = int(0.75 * vmem_limit_bytes)            # headroom for compiler temps
    weights = m * cv * 2 + g_pad * m * 2 + g_pad * 4               # Buffered(1)
    per_iter = cv * hw * 2 + m * hw * 4 + m * hw * 2               # vb + h + x
    per_batch = 2 * (cv * hw * 4 + m * 4 + g_pad * hw * 4)         # dbl-buffered
    bt = max(1, min(int(requested), n))
    while bt > 1 and weights + per_iter + bt * per_batch > budget:
        bt = max(1, bt // 2)
    while bt > 1 and (n + bt - 1) // bt < 2:          # keep >= 2 grid steps
        bt = max(1, bt // 2)
    return bt


def attention_kernel(v_ref, qb_ref, wv_ref, wx_ref, bx_ref, o_ref):
    # v_ref : (B_TILE, Cv, HW)   f32    image features, spatial in lanes
    # qb_ref: (B_TILE, M, 1)     f32    q @ Wq^T + bq + bv  (per-batch column)
    # wv_ref: (M, Cv)            bf16   v_conv weight (1x1 conv == matmul)
    # wx_ref: (Gp, M)            bf16   x_conv weight (zero-padded rows G..Gp)
    # bx_ref: (Gp, 1)            f32    x_conv bias   (zero-padded rows G..Gp)
    # o_ref : (B_TILE, Gp, HW)   f32
    compute_t = wv_ref.dtype
    b_tile = v_ref.shape[0]

    def body(b, carry):
        # f32 -> bf16 cast happens in VMEM (no wrapper HBM pass over v).
        vb = v_ref[b].astype(compute_t)                          # (Cv, HW)
        # 1x1 conv over channels == MXU matmul: (M, Cv) @ (Cv, HW).
        h = jnp.dot(wv_ref[...], vb, preferred_element_type=jnp.float32)
        # tile_2d_over_nd == lane-broadcast of the (M, 1) question column;
        # bias add + ReLU in f32 (safe on v5e, matches reference exactly).
        x = jnp.maximum(h + qb_ref[b], 0.0).astype(compute_t)    # (M, HW)
        # x_conv (1x1 conv) + bias -> (Gp, HW).
        o_ref[b] = (jnp.dot(wx_ref[...], x, preferred_element_type=jnp.float32)
                    + bx_ref[...])
        return carry

    # fori_loop (not a Python for): bounds live ranges to one iteration and
    # gives the scheduler a visible loop; unroll=False on purpose -- the body
    # is MXU-dominated so per-iteration loop overhead is negligible.
    lax.fori_loop(0, b_tile, body, None, unroll=False)


def attention_pallas(v_nchw, q, params, *, b_tile=16,
                     compute_dtype=jnp.bfloat16,
                     vmem_limit_bytes=48 * 1024 * 1024):
    """v_nchw: (N, Cv, H, W), q: (N, Cq).  Returns (N, G, H, W) float32.

    params (PyTorch layout):
      wv: (M, Cv)  v_conv weight (M, Cv, 1, 1) squeezed      bv: (M,)
      wq: (M, Cq)  q_lin weight                              bq: (M,)
      wx: (G, M)   x_conv weight (G, M, 1, 1) squeezed       bx: (G,)

    vmem_limit_bytes: keep <= ~48 MiB on v7x (64 MiB physical per TC);
    may be raised to 64-96 MiB on v5e / v6e (128 MiB physical).
    """
    wv, bv, wq, bq, wx, bx = params
    N, Cv, H, W = v_nchw.shape
    M = wv.shape[0]
    G = wx.shape[0]
    HW = H * W
    G_pad = _round_up(G, 8)          # full sublane tile for the output rows

    # v: pure reshape only -- NO pad / cast / transpose HBM pass.
    v3 = v_nchw.reshape(N, Cv, HW)

    # Hoisted tiny q projection (one small XLA GEMM) with BOTH biases folded:
    #   relu(Wv@v + bv + (q@Wq^T + bq)) == relu(Wv@v + q_mid)
    q_mid = (q.astype(jnp.float32) @ wq.astype(jnp.float32).T
             + bq.astype(jnp.float32) + bv.astype(jnp.float32))   # (N, M)
    qb = q_mid[:, :, None]                                        # (N, M, 1)

    wv_k = wv.astype(compute_dtype)                               # (M, Cv)
    wx_k = jnp.pad(wx.astype(compute_dtype), ((0, G_pad - G), (0, 0)))
    bx_k = jnp.pad(bx.astype(jnp.float32), (0, G_pad - G)).reshape(G_pad, 1)

    b_tile = _pick_b_tile(b_tile, N, Cv, M, HW, G_pad, vmem_limit_bytes)
    grid = ((N + b_tile - 1) // b_tile,)      # cdiv: edge block is masked

    cost = pl.CostEstimate(
        flops=2 * N * HW * Cv * M + 2 * N * HW * M * G_pad,
        transcendentals=0,
        bytes_accessed=(N * Cv * HW * 4 + N * M * 4 + N * G_pad * HW * 4
                        + M * Cv * 2 + G_pad * M * 2 + G_pad * 4))

    def make_call(weight_pipeline_mode):
        wkw = ({} if weight_pipeline_mode is None
               else {"pipeline_mode": weight_pipeline_mode})
        return pl.pallas_call(
            attention_kernel,
            out_shape=jax.ShapeDtypeStruct((N, G_pad, HW), jnp.float32),
            grid_spec=pltpu.PrefetchScalarGridSpec(
                num_scalar_prefetch=0,
                grid=grid,
                in_specs=[
                    pl.BlockSpec((b_tile, Cv, HW), lambda i: (i, 0, 0)),  # v
                    pl.BlockSpec((b_tile, M, 1), lambda i: (i, 0, 0)),    # q_mid
                    pl.BlockSpec((M, Cv), lambda i: (0, 0), **wkw),       # Wv
                    pl.BlockSpec((G_pad, M), lambda i: (0, 0), **wkw),    # Wx
                    pl.BlockSpec((G_pad, 1), lambda i: (0, 0), **wkw),    # bx
                ],
                out_specs=pl.BlockSpec((b_tile, G_pad, HW),
                                       lambda i: (i, 0, 0)),
            ),
            compiler_params=pltpu.CompilerParams(
                dimension_semantics=("parallel",),
                vmem_limit_bytes=vmem_limit_bytes,
            ),
            cost_estimate=cost,
        )

    try:
        # Constant-index weight blocks single-buffered: frees ~2 MiB VMEM on
        # realistic shapes (Cv=2048, M=512), directly usable for larger b_tile.
        out = make_call(pl.Buffered(1))(v3, qb, wv_k, wx_k, bx_k)
    except Exception:
        # Fallback: default double-buffering (costs only the extra Wv copy).
        out = make_call(None)(v3, qb, wv_k, wx_k, bx_k)

    # Drop the zero-padded glimpse rows; output HBM slab is tiny (Gp*HW f32
    # per batch), so the masked stores / wrapper slice are negligible.
    return out[:, :G, :].reshape(N, G, H, W)


def attention_reference(v_nchw, q, params, compute_dtype=jnp.bfloat16):
    """Pure-JAX reference matching the PyTorch forward (eval mode), using the
    same mixed precision (bf16 matmul inputs, f32 accumulation, f32 bias+relu)
    as the kernel."""
    wv, bv, wq, bq, wx, bx = params
    N, Cv, H, W = v_nchw.shape
    v = v_nchw.reshape(N, Cv, H * W).astype(compute_dtype)
    q_mid = (q.astype(jnp.float32) @ wq.astype(jnp.float32).T
             + bq.astype(jnp.float32) + bv.astype(jnp.float32))   # (N, M)
    h = jnp.einsum('mc,nch->nmh', wv.astype(compute_dtype), v,
                   preferred_element_type=jnp.float32)
    x = jnp.maximum(h + q_mid[:, :, None], 0.0).astype(compute_dtype)
    out = jnp.einsum('gm,nmh->ngh', wx.astype(compute_dtype), x,
                     preferred_element_type=jnp.float32)
    out = out + bx.astype(jnp.float32)[None, :, None]
    return out.reshape(N, -1, H, W)


if __name__ == "__main__":
    # Small shapes consistent with the module (glimpses=2 as in SANVQA).
    N = 8             # batch
    Cv = 16           # v_features (conv_output_size)
    Cq = 32           # q_features (lstm_hidden)
    M = 32            # mid_features
    G = 2             # glimpses
    H = W = 8         # spatial

    key = jax.random.PRNGKey(0)
    k = jax.random.split(key, 8)
    v = jax.random.normal(k[0], (N, Cv, H, W), jnp.float32)
    q = jax.random.normal(k[1], (N, Cq), jnp.float32)

    # Deterministic parameters in PyTorch layout.
    wv = jax.random.normal(k[2], (M, Cv), jnp.float32) * 0.1   # v_conv weight
    bv = jax.random.normal(k[3], (M,), jnp.float32) * 0.1      # v_conv bias
    wq = jax.random.normal(k[4], (M, Cq), jnp.float32) * 0.1   # q_lin weight
    bq = jax.random.normal(k[5], (M,), jnp.float32) * 0.1      # q_lin bias
    wx = jax.random.normal(k[6], (G, M), jnp.float32) * 0.1    # x_conv weight
    bx = jax.random.normal(k[7], (G,), jnp.float32) * 0.1      # x_conv bias
    params = (wv, bv, wq, bq, wx, bx)

    # Default b_tile=16 gets auto-clamped to 4 here (>= 2 grid steps for N=8).
    out = jax.block_until_ready(attention_pallas(v, q, params))
    ref = jax.block_until_ready(attention_reference(v, q, params))

    assert out.shape == (N, G, H, W), out.shape
    np.testing.assert_allclose(np.asarray(out), np.asarray(ref),
                               rtol=1e-3, atol=1e-3)
    print("KERNEL_OK")
</pallas_src>

<mosaic_0001>
module attributes {stable_mosaic.version = 11 : i64} {
  func.func @attention_kernel(%arg0: i32, %arg1: memref<4x16x64xf32, #tpu.memory_space<vmem>>, %arg2: memref<4x32x1xf32, #tpu.memory_space<vmem>>, %arg3: memref<32x16xbf16, #tpu.memory_space<vmem>>, %arg4: memref<8x32xbf16, #tpu.memory_space<vmem>>, %arg5: memref<8x1xf32, #tpu.memory_space<vmem>>, %arg6: memref<4x8x64xf32, #tpu.memory_space<vmem>>) attributes {dimension_semantics = [#tpu.dimension_semantics<parallel>], iteration_bounds = array<i64: 2>, scalar_prefetch = 0 : i64, scratch_operands = 0 : i64, tpu.core_type = #tpu.core_type<tc>, window_params = [{transform_indices = @transform_0, window_bounds = array<i64: 4, 16, 64>}, {transform_indices = @transform_1, window_bounds = array<i64: 4, 32, 1>}, {pipeline_mode = #tpu.pipeline_mode<synchronous>, transform_indices = @transform_2, window_bounds = array<i64: 32, 16>}, {pipeline_mode = #tpu.pipeline_mode<synchronous>, transform_indices = @transform_3, window_bounds = array<i64: 8, 32>}, {pipeline_mode = #tpu.pipeline_mode<synchronous>, transform_indices = @transform_4, window_bounds = array<i64: 8, 1>}, {transform_indices = @transform_5, window_bounds = array<i64: 4, 8, 64>}]} {
    %c0_i32 = arith.constant 0 : i32
    %c4_i32 = arith.constant 4 : i32
    %0 = arith.addi %c0_i32, %c4_i32 : i32
    %c1_i32 = arith.constant 1 : i32
    scf.for %arg7 = %c0_i32 to %0 step %c1_i32  : i32 {
      %1 = arith.index_cast %arg7 : i32 to index
      %c0 = arith.constant 0 : index
      %c0_1 = arith.constant 0 : index
      %2 = vector.load %arg1[%1, %c0, %c0_1] : memref<4x16x64xf32, #tpu.memory_space<vmem>>, vector<1x16x64xf32>
      %3 = vector.shape_cast %2 : vector<1x16x64xf32> to vector<16x64xf32>
      %4 = arith.truncf %3 : vector<16x64xf32> to vector<16x64xbf16>
      %c0_2 = arith.constant 0 : index
      %c0_3 = arith.constant 0 : index
      %5 = vector.load %arg3[%c0_2, %c0_3] : memref<32x16xbf16, #tpu.memory_space<vmem>>, vector<32x16xbf16>
      %cst = arith.constant dense<0.000000e+00> : vector<32x64xf32>
      %6 = tpu.matmul %5, %4, %cst {dimension_numbers = #tpu.dot_dimension_numbers<[1], [0], [0], [1], [0, 0, 1, 1], [], []>} : vector<32x16xbf16>, vector<16x64xbf16>, vector<32x64xf32> -> vector<32x64xf32>
      %7 = arith.index_cast %arg7 : i32 to index
      %c0_4 = arith.constant 0 : index
      %c0_5 = arith.constant 0 : index
      %8 = vector.load %arg2[%7, %c0_4, %c0_5] : memref<4x32x1xf32, #tpu.memory_space<vmem>>, vector<1x32x1xf32>
      %9 = vector.shape_cast %8 : vector<1x32x1xf32> to vector<32x1xf32>
      %10 = vector.broadcast %9 : vector<32x1xf32> to vector<32x64xf32>
      %11 = arith.addf %6, %10 : vector<32x64xf32>
      %cst_6 = arith.constant 0.000000e+00 : f32
      %12 = vector.broadcast %cst_6 : f32 to vector<32x64xf32>
      %13 = arith.maximumf %11, %12 : vector<32x64xf32>
      %14 = arith.truncf %13 : vector<32x64xf32> to vector<32x64xbf16>
      %c0_7 = arith.constant 0 : index
      %c0_8 = arith.constant 0 : index
      %15 = vector.load %arg4[%c0_7, %c0_8] : memref<8x32xbf16, #tpu.memory_space<vmem>>, vector<8x32xbf16>
      %cst_9 = arith.constant dense<0.000000e+00> : vector<8x64xf32>
      %16 = tpu.matmul %15, %14, %cst_9 {dimension_numbers = #tpu.dot_dimension_numbers<[1], [0], [0], [1], [0, 0, 1, 1], [], []>} : vector<8x32xbf16>, vector<32x64xbf16>, vector<8x64xf32> -> vector<8x64xf32>
      %c0_10 = arith.constant 0 : index
      %c0_11 = arith.constant 0 : index
      %17 = vector.load %arg5[%c0_10, %c0_11] : memref<8x1xf32, #tpu.memory_space<vmem>>, vector<8x1xf32>
      %18 = vector.broadcast %17 : vector<8x1xf32> to vector<8x64xf32>
      %19 = arith.addf %16, %18 : vector<8x64xf32>
      %20 = arith.index_cast %arg7 : i32 to index
      %c0_12 = arith.constant 0 : index
      %c0_13 = arith.constant 0 : index
      %21 = vector.load %arg6[%20, %c0_12, %c0_13] : memref<4x8x64xf32, #tpu.memory_space<vmem>>, vector<1x8x64xf32>
      %22 = vector.shape_cast %21 : vector<1x8x64xf32> to vector<8x64xf32>
      %23 = vector.shape_cast %19 : vector<8x64xf32> to vector<1x8x64xf32>
      tpu.vector_store %arg6[%20, %c0_12, %c0_13], %23 {strides = array<i32>} : memref<4x8x64xf32, #tpu.memory_space<vmem>>, vector<1x8x64xf32>,
    }
    %c4_i32_0 = arith.constant 4 : i32
    return
  }
  func.func @transform_0(%arg0: i32) -> (i32, i32, i32) {
    %c0_i32 = arith.constant 0 : i32
    %c0_i32_0 = arith.constant 0 : i32
    %c0_i32_1 = arith.constant 0 : i32
    return %arg0, %c0_i32, %c0_i32_0 : i32, i32, i32
  }
  func.func @transform_1(%arg0: i32) -> (i32, i32, i32) {
    %c0_i32 = arith.constant 0 : i32
    %c0_i32_0 = arith.constant 0 : i32
    %c0_i32_1 = arith.constant 0 : i32
    return %arg0, %c0_i32, %c0_i32_0 : i32, i32, i32
  }
  func.func @transform_2(%arg0: i32) -> (i32, i32) {
    %c0_i32 = arith.constant 0 : i32
    %c0_i32_0 = arith.constant 0 : i32
    %c0_i32_1 = arith.constant 0 : i32
    return %c0_i32, %c0_i32_0 : i32, i32
  }
  func.func @transform_3(%arg0: i32) -> (i32, i32) {
    %c0_i32 = arith.constant 0 : i32
    %c0_i32_0 = arith.constant 0 : i32
    %c0_i32_1 = arith.constant 0 : i32
    return %c0_i32, %c0_i32_0 : i32, i32
  }
  func.func @transform_4(%arg0: i32) -> (i32, i32) {
    %c0_i32 = arith.constant 0 : i32
    %c0_i32_0 = arith.constant 0 : i32
    %c0_i32_1 = arith.constant 0 : i32
    return %c0_i32, %c0_i32_0 : i32, i32
  }
  func.func @transform_5(%arg0: i32) -> (i32, i32, i32) {
    %c0_i32 = arith.constant 0 : i32
    %c0_i32_0 = arith.constant 0 : i32
    %c0_i32_1 = arith.constant 0 : i32
    return %arg0, %c0_i32, %c0_i32_0 : i32, i32, i32
  }
}

module attributes {stable_mosaic.version = 11 : i64} {
  func.func @attention_kernel(%arg0: i32, %arg1: memref<4x16x64xf32, #tpu.memory_space<vmem>>, %arg2: memref<4x32x1xf32, #tpu.memory_space<vmem>>, %arg3: memref<32x16xbf16, #tpu.memory_space<vmem>>, %arg4: memref<8x32xbf16, #tpu.memory_space<vmem>>, %arg5: memref<8x1xf32, #tpu.memory_space<vmem>>, %arg6: memref<4x8x64xf32, #tpu.memory_space<vmem>>) attributes {dimension_semantics = [#tpu.dimension_semantics<parallel>], iteration_bounds = array<i64: 2>, scalar_prefetch = 0 : i64, scratch_operands = 0 : i64, tpu.core_type = #tpu.core_type<tc>, window_params = [{transform_indices = @transform_0, window_bounds = array<i64: 4, 16, 64>}, {transform_indices = @transform_1, window_bounds = array<i64: 4, 32, 1>}, {pipeline_mode = #tpu.pipeline_mode<synchronous>, transform_indices = @transform_2, window_bounds = array<i64: 32, 16>}, {pipeline_mode = #tpu.pipeline_mode<synchronous>, transform_indices = @transform_3, window_bounds = array<i64: 8, 32>}, {pipeline_mode = #tpu.pipeline_mode<synchronous>, transform_indices = @transform_4, window_bounds = array<i64: 8, 1>}, {transform_indices = @transform_5, window_bounds = array<i64: 4, 8, 64>}]} {
    %c0_i32 = arith.constant 0 : i32
    %c4_i32 = arith.constant 4 : i32
    %0 = arith.addi %c0_i32, %c4_i32 : i32
    %c1_i32 = arith.constant 1 : i32
    scf.for %arg7 = %c0_i32 to %0 step %c1_i32  : i32 {
      %1 = arith.index_cast %arg7 : i32 to index
      %c0 = arith.constant 0 : index
      %c0_1 = arith.constant 0 : index
      %2 = vector.load %arg1[%1, %c0, %c0_1] : memref<4x16x64xf32, #tpu.memory_space<vmem>>, vector<1x16x64xf32>
      %3 = vector.shape_cast %2 : vector<1x16x64xf32> to vector<16x64xf32>
      %4 = arith.truncf %3 : vector<16x64xf32> to vector<16x64xbf16>
      %c0_2 = arith.constant 0 : index
      %c0_3 = arith.constant 0 : index
      %5 = vector.load %arg3[%c0_2, %c0_3] : memref<32x16xbf16, #tpu.memory_space<vmem>>, vector<32x16xbf16>
      %cst = arith.constant dense<0.000000e+00> : vector<32x64xf32>
      %6 = tpu.matmul %5, %4, %cst {dimension_numbers = #tpu.dot_dimension_numbers<[1], [0], [0], [1], [0, 0, 1, 1], [], []>} : vector<32x16xbf16>, vector<16x64xbf16>, vector<32x64xf32> -> vector<32x64xf32>
      %7 = arith.index_cast %arg7 : i32 to index
      %c0_4 = arith.constant 0 : index
      %c0_5 = arith.constant 0 : index
      %8 = vector.load %arg2[%7, %c0_4, %c0_5] : memref<4x32x1xf32, #tpu.memory_space<vmem>>, vector<1x32x1xf32>
      %9 = vector.shape_cast %8 : vector<1x32x1xf32> to vector<32x1xf32>
      %10 = vector.broadcast %9 : vector<32x1xf32> to vector<32x64xf32>
      %11 = arith.addf %6, %10 : vector<32x64xf32>
      %cst_6 = arith.constant 0.000000e+00 : f32
      %12 = vector.broadcast %cst_6 : f32 to vector<32x64xf32>
      %13 = arith.maximumf %11, %12 : vector<32x64xf32>
      %14 = arith.truncf %13 : vector<32x64xf32> to vector<32x64xbf16>
      %c0_7 = arith.constant 0 : index
      %c0_8 = arith.constant 0 : index
      %15 = vector.load %arg4[%c0_7, %c0_8] : memref<8x32xbf16, #tpu.memory_space<vmem>>, vector<8x32xbf16>
      %cst_9 = arith.constant dense<0.000000e+00> : vector<8x64xf32>
      %16 = tpu.matmul %15, %14, %cst_9 {dimension_numbers = #tpu.dot_dimension_numbers<[1], [0], [0], [1], [0, 0, 1, 1], [], []>} : vector<8x32xbf16>, vector<32x64xbf16>, vector<8x64xf32> -> vector<8x64xf32>
      %c0_10 = arith.constant 0 : index
      %c0_11 = arith.constant 0 : index
      %17 = vector.load %arg5[%c0_10, %c0_11] : memref<8x1xf32, #tpu.memory_space<vmem>>, vector<8x1xf32>
      %18 = vector.broadcast %17 : vector<8x1xf32> to vector<8x64xf32>
      %19 = arith.addf %16, %18 : vector<8x64xf32>
      %20 = arith.index_cast %arg7 : i32 to index
      %c0_12 = arith.constant 0 : index
      %c0_13 = arith.constant 0 : index
      %21 = vector.load %arg6[%20, %c0_12, %c0_13] : memref<4x8x64xf32, #tpu.memory_space<vmem>>, vector<1x8x64xf32>
      %22 = vector.shape_cast %21 : vector<1x8x64xf32> to vector<8x64xf32>
      %23 = vector.shape_cast %19 : vector<8x64xf32> to vector<1x8x64xf32>
      tpu.vector_store %arg6[%20, %c0_12, %c0_13], %23 {strides = array<i32>} : memref<4x8x64xf32, #tpu.memory_space<vmem>>, vector<1x8x64xf32>,
    }
    %c4_i32_0 = arith.constant 4 : i32
    return
  }
  func.func @transform_0(%arg0: i32) -> (i32, i32, i32) {
    %c0_i32 = arith.constant 0 : i32
    %c0_i32_0 = arith.constant 0 : i32
    %c0_i32_1 = arith.constant 0 : i32
    return %arg0, %c0_i32, %c0_i32_0 : i32, i32, i32
  }
  func.func @transform_1(%arg0: i32) -> (i32, i32, i32) {
    %c0_i32 = arith.constant 0 : i32
    %c0_i32_0 = arith.constant 0 : i32
    %c0_i32_1 = arith.constant 0 : i32
    return %arg0, %c0_i32, %c0_i32_0 : i32, i32, i32
  }
  func.func @transform_2(%arg0: i32) -> (i32, i32) {
    %c0_i32 = arith.constant 0 : i32
    %c0_i32_0 = arith.constant 0 : i32
    %c0_i32_1 = arith.constant 0 : i32
    return %c0_i32, %c0_i32_0 : i32, i32
  }
  func.func @transform_3(%arg0: i32) -> (i32, i32) {
    %c0_i32 = arith.constant 0 : i32
    %c0_i32_0 = arith.constant 0 : i32
    %c0_i32_1 = arith.constant 0 : i32
    return %c0_i32, %c0_i32_0 : i32, i32
  }
  func.func @transform_4(%arg0: i32) -> (i32, i32) {
    %c0_i32 = arith.constant 0 : i32
    %c0_i32_0 = arith.constant 0 : i32
    %c0_i32_1 = arith.constant 0 : i32
    return %c0_i32, %c0_i32_0 : i32, i32
  }
  func.func @transform_5(%arg0: i32) -> (i32, i32, i32) {
    %c0_i32 = arith.constant 0 : i32
    %c0_i32_0 = arith.constant 0 : i32
    %c0_i32_1 = arith.constant 0 : i32
    return %arg0, %c0_i32, %c0_i32_0 : i32, i32, i32
  }
}

</mosaic_0001>

<bundles_post_ra>
// kernel: tpu_custom_call.1
= control target key start
LH: loop header
LB: loop body
LE: loop exit
PB: predicated region body
PF: predicated region fallthrough
CT: control target
= control target key end

     0   :  { %10 = vsyncpa [#allocation3], 0  ;;  %s788_s0 = inlined_call_operand.vmem [shape: f32[8,16,64], index: 0, kind: input, shape index: {}]   ;;  %s789_s1 = inlined_call_operand.vmem [shape: f32[8,32,1], index: 1, kind: input, shape index: {}]   ;;  %s790_s2 = inlined_call_operand.vmem [shape: bf16[32,16], index: 2, kind: input, shape index: {}]   ;;  %s791_s3 = inlined_call_operand.vmem [shape: bf16[8,32], index: 3, kind: input, shape index: {}]   ;;  %s792_s4 = inlined_call_operand.vmem [shape: f32[8,1], index: 4, kind: input, shape index: {}]   ;;  %s793_s5 = inlined_call_operand.hbm [shape: f32[8,8,64], index: 5, kind: output, shape index: {}]  }
   0x1   :  { %12 = vsyncpa [#allocation3 + $0x1], 0  ;;  %s661_s18 = smov 0   ;;  %s663_s19 = smov 0  }
   0x2   :  { %s665_s20 = smov 0   ;;  %s667_s21 = smov 0  }
   0x3 LB: > { %s682_s22 = sadd.s32 4294967295, %s622_s21   ;;  %s467_s23 = sadd.s32 4294967294, %s622_s21   ;;  %s622_s21 = sphi %s667_s21, %s799_s21   ;;  %s618_s20 = sphi %s665_s20, %s798_s20   ;;  %s614_s19 = sphi %s663_s19, %s797_s19   ;;  %s610_s18 = sphi %s661_s18, %s796_s18  }
   0x4   : > { %s686_s24 = sadd.s32 1, %s622_s21   ;;  %s140_s25 = sadd.s32 1, %s618_s20 }
   0x5   : > { %s137_s26 = ssub.s32 %s622_s21, %s686_s24  ;;  %p150_p0 = scmp.ne.s32.totalorder %s618_s20, %s614_s19 }
   0x6   : > { %p138_p1 = scmp.eq.s32.totalorder %s137_s26, 0  ;;  %p151_p2 = scmp.eq.s32.totalorder %s682_s22, 1 }
   0x7   : > { %p156_p3 = scmp.ne.s32.totalorder %s614_s19, %s610_s18  ;;  %p157_p4 = scmp.eq.s32.totalorder %s467_s23, 1 }
   0x8   : > { %s697_s27 = scalar_select %p138_p1, %s618_s20, %s140_s25  }
   0x9   : > { %p699_p5 = por %p151_p2, %p150_p0  ;;  %p703_p6 = por %p157_p4, %p156_p3 }
   0xa   : > { %p470_p7 = scmp.ge.s32.totalorder %s622_s21, 1  ;;  %p204_p8 = scmp.lt.s32.totalorder %s622_s21, 3 }
   0xc   : > { %p205_p9 = pnand %p470_p7, %p204_p8 }
   0xd   : > { %s236_s30 = sand.u32 (!%p205_p9), 1, %s614_s19   ;;  %s472_s6 = sshll.u32 (!%p205_p9), %s682_s22, 2 }
   0xe   : > { %208 = sbr.rel (%p205_p9) target bundleno = 320 (0x140), region = 40  ;;  %s713_s7 = sshll.u32 (!%p205_p9), %s236_s30, 5 }
   0xf   : > { %p240_p10 = scmp.lt.s32.totalorder (!%p205_p9), %s472_s6, 7  ;;  %s238_s16 = scalar_lea.vmem (!%p205_p9), [#allocation2], %s713_s7 }
  0x10   : > { %s726_s17 = smov (!%p205_p9), 0  }
  0x13   : > { %s801_s6 = smov (!%p240_p10, %s472_s6), 7 }
  0x14   : > { %s497_s8 = sshll.u32 %s801_s6, 4  ;;  %s498_s9 = sshll.u32 %s801_s6, 5 }
  0x15   : > { %s718_s12 = scalar_lea.vmem %s788_s0, %s497_s8  ;;  %s723_s15 = scalar_lea.vmem %s789_s1, %s498_s9 }
  0x16 LB: >> { %v628_v0 = vmov 0   ;;  %s478_s23 = sshll.u32 %s626_s17, 4  ;;  %s479_s25 = sshll.u32 %s626_s17, 5  ;;  %v500_v6 = vld [vmem:[%s790_s2 + $0x8] sm:$0xff]  ;;  %v499_v7 = vld [vmem:[%s790_s2] sm:$0xff]  ;;  %vm306_vm0 = vcmask 130048   ;;  %s626_s17 = sphi %s726_s17, %s260_s17  }
  0x17   : >> { %553 = vset.pattern.permute.xlu0 %v628_v0  ;;  %554 = vset.pattern.permute.xlu1 %v628_v0  ;;  %s262_s26 = scalar_lea.vmem %s718_s12, %s478_s23  ;;  %s271_s6 = scalar_lea.vmem %s723_s15, %s479_s25  ;;  %v339_v10 = vld [vmem:[%s792_s4] sm:$0xff]  ;;  %vm345_vm1 = vcmask 261120   ;;  %vm364_vm2 = vcmask 523264  }
  0x18   : >> { %555 = vset.pattern.permute.xlu2 %v628_v0  ;;  %v263_v1 = vld [vmem:[%s262_s26] sm:$0xff]  ;;  %v264_v2 = vld [vmem:[%s262_s26 + $0x8] sm:$0xff]  ;;  %v274_v3 = vld [vmem:[%s271_s6 + $0x10] sm:$0xff]  ;;  %s491_s26 = sshll.u32 %s626_s17, 3  ;;  %s260_s17 = sadd.s32 1, %s626_s17  }
  0x19   : >> { %v265_v4 = vpack.c.bf16 %v264_v2, %v263_v1  ;;  %288 = vperm.xlu0 %553, %v274_v3   ;;  %v272_v5 = vld [vmem:[%s271_s6] sm:$0xff]  ;;  %v275_v8 = vld [vmem:[%s271_s6 + $0x18] sm:$0xff]  ;;  %v273_v9 = vld [vmem:[%s271_s6 + $0x8] sm:$0xff]  ;;  %342 = vperm.xlu2 %555, %v339_v10   ;;  %s363_s6 = scalar_lea.vmem %s238_s16, %s491_s26 [#allocation2]  ;;  %p257_p11 = scmp.ge.s32.totalorder %s260_s17, 4  }
  0x1a   : >> { %278 = vperm.xlu1 %554, %v272_v5   ;;  %v338_v29 = vld [vmem:[%s791_s3] sm:$0xf]  ;;  %s501_s8 = sshll.u32 (%p257_p11), %s682_s22, 5  ;;  %s379_s13 = sshll.u32 (%p257_p11), %s238_s16, 4  ;;  %s380_s13 = int_to_ptr.vmem [resolvable:$true] %s379_s13 }
  0x1b   : >> { %502 = vmatpush.bf16.msra.mxu2 %v265_v4  ;;  %320 = vmatpush.bf16.msra.mxu0 %v265_v4  ;;  %s378_s11 = scalar_lea.hbm (%p257_p11), %s793_s5, %s501_s8  ;;  %s367_s23 = scalar_lea.sflag (%p257_p11), [#allocation3], %s236_s30 }
  0x1c   : > { %s381_s14 = sshll.u32 (%p257_p11), %s378_s11, 4  ;;  %s576_s15 = scalar_lea.hbm (%p257_p11), %s793_s5, 64  ;;  %s382_s14 = int_to_ptr.hbm [resolvable:$true] %s381_s14 }
  0x1d   : > { %s570_s25 = sshra.s32 (%p257_p11), %s382_s14, 4  ;;  %s571_s25 = int_to_ptr.hbm [resolvable:$true] %s570_s25 }
  0x1e   : >> { %489 = vmatmul.msk.bf16.vlgmr.msra.gmra.mxu2 %vm306_vm0, %v500_v6  ;;  %488 = vmatmul.msk.bf16.vlgmr.msra.gmra.mxu0 %vm306_vm0, %v499_v7  ;;  %s572_s17 = scalar_lea.hbm (%p257_p11), %s571_s25, 32  ;;  %p577_p1 = scmp.lt.s32.totalorder (%p257_p11), %s571_s25, %s793_s5 }
  0x1f   : > { %p573_p12 = scmp.ne.s32.totalorder (%p257_p11), %s571_s25, %s572_s17  ;;  %p578_p2 = scmp.lt.s32.totalorder (%p257_p11), %s576_s15, %s572_s17 }
  0x21   : >> { %293 = vperm.xlu0 %553, %v275_v8   ;;  %p574_p13 = pnand (%p257_p11), %p573_p12, %p699_p5  ;;  %p579_p3 = por (%p257_p11), %p578_p2, %p577_p1 }
  0x22   : >> { %283 = vperm.xlu1 %554, %v273_v9  }
  0x23   : > { %p575_p0 = pneg (%p257_p11), %p574_p13 }
  0x25   : > { %p580_p4 = pnand (%p257_p11), %p579_p3, %p575_p0 }
  0x73   : >> { %v343_v30 = vpop.permute.xlu2 %342 }
  0x8b   : >> { %v289_v13 = vpop.permute.xlu0 %288 }
  0x8c   : >> { %v279_v11 = vpop.permute.xlu1 %278 }
  0x93   : >> { %v294_v18 = vpop.permute.xlu0 %293 }
  0x94   : >> { %v284_v15 = vpop.permute.xlu1 %283 }
  0x9b   : >> { %v322_v12 = vpop.f32.mrf.mxu0 }
  0x9c   : >> { %v323_v20 = vadd.f32 %v322_v12, %v279_v11 }
  0x9e   : >> { %v332_v25 = vmax.f32 %v323_v20, 0.0 }
  0xa1   : >> { %v327_v14 = vpop.f32.mrf.mxu2 }
  0xa2   : >> { %v328_v17 = vadd.f32 %v327_v14, %v289_v13 }
  0xa3   : >> { %v324_v16 = vpop.f32.mrf.mxu0 }
  0xa4   : >> { %v325_v21 = vadd.f32 %v324_v16, %v284_v15  ;;  %v334_v23 = vmax.f32 %v328_v17, 0.0 }
  0xa6   : >> { %v333_v26 = vmax.f32 %v325_v21, 0.0 }
  0xa8   : >> { %v336_v28 = vpack.c.bf16 %v333_v26, %v332_v25 }
  0xa9   : >> { %v329_v19 = vpop.f32.mrf.mxu2 }
  0xaa   : >> { %v330_v22 = vadd.f32 %v329_v19, %v294_v18 }
  0xac   : >> { %v335_v24 = vmax.f32 %v330_v22, 0.0 }
  0xae   : >> { %v337_v27 = vpack.c.bf16 %v335_v24, %v334_v23 }
  0xb0   : >> { %355 = vmatpush.bf16.msra.mxu1 %v337_v27 }
  0xb4   : >> { %356 = vmatpush.bf16.msra.mxu1 %v336_v28 }
  0xb7   : >> { %490 = vmatmul.msk.bf16.vlgmr.msra.gmra.mxu1 %vm345_vm1, %v338_v29 }
 0x134   : >> { %v358_v31 = vpop.f32.mrf.mxu1 }
 0x135   : >> { %v359_v32 = vadd.f32 %v358_v31, %v343_v30 }
 0x137   : >> { %365 = vst.msk [vmem:[%s363_s6] sm:$0xff] %vm364_vm2, %v359_v32 }
 0x138   : > { %259 = sbr.rel (!%p257_p11) target bundleno = 22 (0x16), region = 88 }
 0x13c   : >> { %v360_v33 = vpop.f32.mrf.mxu1 }
 0x13d   : > { %583 = shalt.err (!%p580_p4)
}
 0x13e   : > { %s629_s30 = smov 128   ;;  %s630_s7 = smov 8  }
 0x13f   : > { %503 = dma.vmem_to_hbm [thread:$0]  (%p699_p5), %s380_s13, 512, %s382_s14, %s367_s23, %s629_s30, %s629_s30, %s630_s7  }
 0x140 PF: > { %p509_p7 = scmp.ge.s32.totalorder %s622_s21, 2  ;;  %s396_s16 = sand.u32 1, %s610_s18  }
 0x141   : > { %s397_s8 = scalar_lea.sflag [#allocation3], %s396_s16 }
 0x142   : > { %p506_p8 = pnand %p509_p7, %p703_p6 }
 0x144   : > { %p507_p9 = pneg %p506_p8 }
 0x146   : > { %605 = dma.done.wait (%p507_p9), %s397_s8, 512  }
 0x147   : > { %607 = vsyncadd (%p507_p9), %s397_s8, 4294966784  ;;  %p15_p10 = scmp.ge.s32.totalorder %s686_s24, 4   ;;  %s796_s18 = smov %s614_s19 }
 0x148   : > { %s797_s19 = smov %s618_s20  ;;  %s798_s20 = smov %s697_s27 }
 0x149   : > { %s799_s21 = smov %s686_s24  ;;  %17 = sbr.rel (!%p15_p10) target bundleno = 3 (0x3), region = 99 }
 0x14e   :  { %403 = vsyncpa [#allocation3], 1 }
 0x14f   :  { %405 = vsyncpa [#allocation3 + $0x1], 1 }

// kernel: tpu_custom_call.1
= control target key start
LH: loop header
LB: loop body
LE: loop exit
PB: predicated region body
PF: predicated region fallthrough
CT: control target
= control target key end

     0   :  { %10 = vsyncpa [#allocation3], 0  ;;  %s788_s0 = inlined_call_operand.vmem [shape: f32[8,16,64], index: 0, kind: input, shape index: {}]   ;;  %s789_s1 = inlined_call_operand.vmem [shape: f32[8,32,1], index: 1, kind: input, shape index: {}]   ;;  %s790_s2 = inlined_call_operand.vmem [shape: bf16[32,16], index: 2, kind: input, shape index: {}]   ;;  %s791_s3 = inlined_call_operand.vmem [shape: bf16[8,32], index: 3, kind: input, shape index: {}]   ;;  %s792_s4 = inlined_call_operand.vmem [shape: f32[8,1], index: 4, kind: input, shape index: {}]   ;;  %s793_s5 = inlined_call_operand.hbm [shape: f32[8,8,64], index: 5, kind: output, shape index: {}]  }
   0x1   :  { %12 = vsyncpa [#allocation3 + $0x1], 0  ;;  %s661_s18 = smov 0   ;;  %s663_s19 = smov 0  }
   0x2   :  { %s665_s20 = smov 0   ;;  %s667_s21 = smov 0  }
   0x3 LB: > { %s682_s22 = sadd.s32 4294967295, %s622_s21   ;;  %s467_s23 = sadd.s32 4294967294, %s622_s21   ;;  %s622_s21 = sphi %s667_s21, %s799_s21   ;;  %s618_s20 = sphi %s665_s20, %s798_s20   ;;  %s614_s19 = sphi %s663_s19, %s797_s19   ;;  %s610_s18 = sphi %s661_s18, %s796_s18  }
   0x4   : > { %s686_s24 = sadd.s32 1, %s622_s21   ;;  %s140_s25 = sadd.s32 1, %s618_s20 }
   0x5   : > { %s137_s26 = ssub.s32 %s622_s21, %s686_s24  ;;  %p150_p0 = scmp.ne.s32.totalorder %s618_s20, %s614_s19 }
   0x6   : > { %p138_p1 = scmp.eq.s32.totalorder %s137_s26, 0  ;;  %p151_p2 = scmp.eq.s32.totalorder %s682_s22, 1 }
   0x7   : > { %p156_p3 = scmp.ne.s32.totalorder %s614_s19, %s610_s18  ;;  %p157_p4 = scmp.eq.s32.totalorder %s467_s23, 1 }
   0x8   : > { %s697_s27 = scalar_select %p138_p1, %s618_s20, %s140_s25  }
   0x9   : > { %p699_p5 = por %p151_p2, %p150_p0  ;;  %p703_p6 = por %p157_p4, %p156_p3 }
   0xa   : > { %p470_p7 = scmp.ge.s32.totalorder %s622_s21, 1  ;;  %p204_p8 = scmp.lt.s32.totalorder %s622_s21, 3 }
   0xc   : > { %p205_p9 = pnand %p470_p7, %p204_p8 }
   0xd   : > { %s236_s30 = sand.u32 (!%p205_p9), 1, %s614_s19   ;;  %s472_s6 = sshll.u32 (!%p205_p9), %s682_s22, 2 }
   0xe   : > { %208 = sbr.rel (%p205_p9) target bundleno = 320 (0x140), region = 40  ;;  %s713_s7 = sshll.u32 (!%p205_p9), %s236_s30, 5 }
   0xf   : > { %p240_p10 = scmp.lt.s32.totalorder (!%p205_p9), %s472_s6, 7  ;;  %s238_s16 = scalar_lea.vmem (!%p205_p9), [#allocation2], %s713_s7 }
  0x10   : > { %s726_s17 = smov (!%p205_p9), 0  }
  0x13   : > { %s801_s6 = smov (!%p240_p10, %s472_s6), 7 }
  0x14   : > { %s497_s8 = sshll.u32 %s801_s6, 4  ;;  %s498_s9 = sshll.u32 %s801_s6, 5 }
  0x15   : > { %s718_s12 = scalar_lea.vmem %s788_s0, %s497_s8  ;;  %s723_s15 = scalar_lea.vmem %s789_s1, %s498_s9 }
  0x16 LB: >> { %v628_v0 = vmov 0   ;;  %s478_s23 = sshll.u32 %s626_s17, 4  ;;  %s479_s25 = sshll.u32 %s626_s17, 5  ;;  %v500_v6 = vld [vmem:[%s790_s2 + $0x8] sm:$0xff]  ;;  %v499_v7 = vld [vmem:[%s790_s2] sm:$0xff]  ;;  %vm306_vm0 = vcmask 130048   ;;  %s626_s17 = sphi %s726_s17, %s260_s17  }
  0x17   : >> { %553 = vset.pattern.permute.xlu0 %v628_v0  ;;  %554 = vset.pattern.permute.xlu1 %v628_v0  ;;  %s262_s26 = scalar_lea.vmem %s718_s12, %s478_s23  ;;  %s271_s6 = scalar_lea.vmem %s723_s15, %s479_s25  ;;  %v339_v10 = vld [vmem:[%s792_s4] sm:$0xff]  ;;  %vm345_vm1 = vcmask 261120   ;;  %vm364_vm2 = vcmask 523264  }
  0x18   : >> { %555 = vset.pattern.permute.xlu2 %v628_v0  ;;  %v263_v1 = vld [vmem:[%s262_s26] sm:$0xff]  ;;  %v264_v2 = vld [vmem:[%s262_s26 + $0x8] sm:$0xff]  ;;  %v274_v3 = vld [vmem:[%s271_s6 + $0x10] sm:$0xff]  ;;  %s491_s26 = sshll.u32 %s626_s17, 3  ;;  %s260_s17 = sadd.s32 1, %s626_s17  }
  0x19   : >> { %v265_v4 = vpack.c.bf16 %v264_v2, %v263_v1  ;;  %288 = vperm.xlu0 %553, %v274_v3   ;;  %v272_v5 = vld [vmem:[%s271_s6] sm:$0xff]  ;;  %v275_v8 = vld [vmem:[%s271_s6 + $0x18] sm:$0xff]  ;;  %v273_v9 = vld [vmem:[%s271_s6 + $0x8] sm:$0xff]  ;;  %342 = vperm.xlu2 %555, %v339_v10   ;;  %s363_s6 = scalar_lea.vmem %s238_s16, %s491_s26 [#allocation2]  ;;  %p257_p11 = scmp.ge.s32.totalorder %s260_s17, 4  }
  0x1a   : >> { %278 = vperm.xlu1 %554, %v272_v5   ;;  %v338_v29 = vld [vmem:[%s791_s3] sm:$0xf]  ;;  %s501_s8 = sshll.u32 (%p257_p11), %s682_s22, 5  ;;  %s379_s13 = sshll.u32 (%p257_p11), %s238_s16, 4  ;;  %s380_s13 = int_to_ptr.vmem [resolvable:$true] %s379_s13 }
  0x1b   : >> { %502 = vmatpush.bf16.msra.mxu2 %v265_v4  ;;  %320 = vmatpush.bf16.msra.mxu0 %v265_v4  ;;  %s378_s11 = scalar_lea.hbm (%p257_p11), %s793_s5, %s501_s8  ;;  %s367_s23 = scalar_lea.sflag (%p257_p11), [#allocation3], %s236_s30 }
  0x1c   : > { %s381_s14 = sshll.u32 (%p257_p11), %s378_s11, 4  ;;  %s576_s15 = scalar_lea.hbm (%p257_p11), %s793_s5, 64  ;;  %s382_s14 = int_to_ptr.hbm [resolvable:$true] %s381_s14 }
  0x1d   : > { %s570_s25 = sshra.s32 (%p257_p11), %s382_s14, 4  ;;  %s571_s25 = int_to_ptr.hbm [resolvable:$true] %s570_s25 }
  0x1e   : >> { %489 = vmatmul.msk.bf16.vlgmr.msra.gmra.mxu2 %vm306_vm0, %v500_v6  ;;  %488 = vmatmul.msk.bf16.vlgmr.msra.gmra.mxu0 %vm306_vm0, %v499_v7  ;;  %s572_s17 = scalar_lea.hbm (%p257_p11), %s571_s25, 32  ;;  %p577_p1 = scmp.lt.s32.totalorder (%p257_p11), %s571_s25, %s793_s5 }
  0x1f   : > { %p573_p12 = scmp.ne.s32.totalorder (%p257_p11), %s571_s25, %s572_s17  ;;  %p578_p2 = scmp.lt.s32.totalorder (%p257_p11), %s576_s15, %s572_s17 }
  0x21   : >> { %293 = vperm.xlu0 %553, %v275_v8   ;;  %p574_p13 = pnand (%p257_p11), %p573_p12, %p699_p5  ;;  %p579_p3 = por (%p257_p11), %p578_p2, %p577_p1 }
  0x22   : >> { %283 = vperm.xlu1 %554, %v273_v9  }
  0x23   : > { %p575_p0 = pneg (%p257_p11), %p574_p13 }
  0x25   : > { %p580_p4 = pnand (%p257_p11), %p579_p3, %p575_p0 }
  0x73   : >> { %v343_v30 = vpop.permute.xlu2 %342 }
  0x8b   : >> { %v289_v13 = vpop.permute.xlu0 %288 }
  0x8c   : >> { %v279_v11 = vpop.permute.xlu1 %278 }
  0x93   : >> { %v294_v18 = vpop.permute.xlu0 %293 }
  0x94   : >> { %v284_v15 = vpop.permute.xlu1 %283 }
  0x9b   : >> { %v322_v12 = vpop.f32.mrf.mxu0 }
  0x9c   : >> { %v323_v20 = vadd.f32 %v322_v12, %v279_v11 }
  0x9e   : >> { %v332_v25 = vmax.f32 %v323_v20, 0.0 }
  0xa1   : >> { %v327_v14 = vpop.f32.mrf.mxu2 }
  0xa2   : >> { %v328_v17 = vadd.f32 %v327_v14, %v289_v13 }
  0xa3   : >> { %v324_v16 = vpop.f32.mrf.mxu0 }
  0xa4   : >> { %v325_v21 = vadd.f32 %v324_v16, %v284_v15  ;;  %v334_v23 = vmax.f32 %v328_v17, 0.0 }
  0xa6   : >> { %v333_v26 = vmax.f32 %v325_v21, 0.0 }
  0xa8   : >> { %v336_v28 = vpack.c.bf16 %v333_v26, %v332_v25 }
  0xa9   : >> { %v329_v19 = vpop.f32.mrf.mxu2 }
  0xaa   : >> { %v330_v22 = vadd.f32 %v329_v19, %v294_v18 }
  0xac   : >> { %v335_v24 = vmax.f32 %v330_v22, 0.0 }
  0xae   : >> { %v337_v27 = vpack.c.bf16 %v335_v24, %v334_v23 }
  0xb0   : >> { %355 = vmatpush.bf16.msra.mxu1 %v337_v27 }
  0xb4   : >> { %356 = vmatpush.bf16.msra.mxu1 %v336_v28 }
  0xb7   : >> { %490 = vmatmul.msk.bf16.vlgmr.msra.gmra.mxu1 %vm345_vm1, %v338_v29 }
 0x134   : >> { %v358_v31 = vpop.f32.mrf.mxu1 }
 0x135   : >> { %v359_v32 = vadd.f32 %v358_v31, %v343_v30 }
 0x137   : >> { %365 = vst.msk [vmem:[%s363_s6] sm:$0xff] %vm364_vm2, %v359_v32 }
 0x138   : > { %259 = sbr.rel (!%p257_p11) target bundleno = 22 (0x16), region = 88 }
 0x13c   : >> { %v360_v33 = vpop.f32.mrf.mxu1 }
 0x13d   : > { %583 = shalt.err (!%p580_p4)
}
 0x13e   : > { %s629_s30 = smov 128   ;;  %s630_s7 = smov 8  }
 0x13f   : > { %503 = dma.vmem_to_hbm [thread:$0]  (%p699_p5), %s380_s13, 512, %s382_s14, %s367_s23, %s629_s30, %s629_s30, %s630_s7  }
 0x140 PF: > { %p509_p7 = scmp.ge.s32.totalorder %s622_s21, 2  ;;  %s396_s16 = sand.u32 1, %s610_s18  }
 0x141   : > { %s397_s8 = scalar_lea.sflag [#allocation3], %s396_s16 }
 0x142   : > { %p506_p8 = pnand %p509_p7, %p703_p6 }
 0x144   : > { %p507_p9 = pneg %p506_p8 }
 0x146   : > { %605 = dma.done.wait (%p507_p9), %s397_s8, 512  }
 0x147   : > { %607 = vsyncadd (%p507_p9), %s397_s8, 4294966784  ;;  %p15_p10 = scmp.ge.s32.totalorder %s686_s24, 4   ;;  %s796_s18 = smov %s614_s19 }
 0x148   : > { %s797_s19 = smov %s618_s20  ;;  %s798_s20 = smov %s697_s27 }
 0x149   : > { %s799_s21 = smov %s686_s24  ;;  %17 = sbr.rel (!%p15_p10) target bundleno = 3 (0x3), region = 99 }
 0x14e   :  { %403 = vsyncpa [#allocation3], 1 }
 0x14f   :  { %405 = vsyncpa [#allocation3 + $0x1], 1 }

</bundles_post_ra>
